<compile_context>
chip_gen: v7x
topology: tpu7x:2x2x1
jax: 0.10.0
libtpu: 0.0.40
codegen_flags: <defaults>
</compile_context>

<pallas_src>
import jax
import jax.numpy as jnp
from jax import lax
from jax.experimental import pallas as pl
from jax.experimental.pallas import tpu as pltpu

K = 5          # cascaded pool kernel size (5x5, applied 1/2/3 times)
P = K // 2     # its "same" padding / radius
NEG_SLOPE = 0.1


def _make_kernel(C, H, W):
    HW = H * W

    def kernel(x_ref, col_ref, w_ref, scale_ref, bias_ref, o_ref,
               vpad_ref, hpad_ref, cat_ref):
        # x_ref:     (C, HW)         VMEM  one batch element, spatially flattened
        # col_ref:   (1, HW) int32   VMEM  column index (j % W) of each lane
        # w_ref:     (C, 4C)         VMEM  1x1 conv weight
        # scale_ref: (C, 1)          VMEM  folded BN scale
        # bias_ref:  (C, 1)          VMEM  folded BN bias
        # o_ref:     (C, HW)         VMEM
        # vpad_ref:  (C, (H+2P)*W)   VMEM scratch, row-padded (top/bottom halos)
        # hpad_ref:  (C, HW+2P)      VMEM scratch, end-padded for lane shifts
        # cat_ref:   (4C, HW)        VMEM scratch, concat buffer for the matmul
        neg_inf = jnp.float32(-jnp.inf)

        # Halo-only -inf init (interiors get overwritten in every pool call).
        vpad_ref[:, 0:P * W] = jnp.full((C, P * W), neg_inf, jnp.float32)
        vpad_ref[:, (P + H) * W:(2 * P + H) * W] = jnp.full(
            (C, P * W), neg_inf, jnp.float32)
        hpad_ref[:, 0:P] = jnp.full((C, P), neg_inf, jnp.float32)
        hpad_ref[:, P + HW:P + HW + P] = jnp.full((C, P), neg_inf, jnp.float32)

        col = col_ref[...]  # (1, HW); broadcasts over channels (sublanes)

        def pool5(src):
            """5x5, stride 1, 'same' max pool (-inf padding) on a (C, HW) slab."""
            # Vertical pass: a shift by dh rows == lane shift by dh*W in the
            # flattened row-major layout; top/bottom halos supply the -inf pad.
            vpad_ref[:, P * W:(P + H) * W] = src
            rm = vpad_ref[:, 0:HW]
            for dh in range(1, K):
                rm = jnp.maximum(rm, vpad_ref[:, dh * W:dh * W + HW])
            # Horizontal pass: lane shifts by +-dw; positions that would cross
            # a row boundary are masked to -inf via the column-index mask.
            hpad_ref[:, P:P + HW] = rm
            out = rm
            for dw in range(1, P + 1):
                right = hpad_ref[:, P + dw:P + dw + HW]     # rm[:, j + dw]
                right = jnp.where(col < (W - dw), right, neg_inf)
                left = hpad_ref[:, P - dw:P - dw + HW]      # rm[:, j - dw]
                left = jnp.where(col >= dw, left, neg_inf)
                out = jnp.maximum(out, jnp.maximum(left, right))
            return out

        x = x_ref[...].astype(jnp.float32)
        p5 = pool5(x)        # 5x5
        p9 = pool5(p5)       # 5x5 o 5x5  == 9x9   (SPPF cascade)
        p13 = pool5(p9)      # 5x5 o 9x9  == 13x13

        # Implicit torch.cat((x1, x2, x3, x4), dim=1): [identity, 5, 9, 13].
        cat_ref[0 * C:1 * C, :] = x
        cat_ref[1 * C:2 * C, :] = p5
        cat_ref[2 * C:3 * C, :] = p9
        cat_ref[3 * C:4 * C, :] = p13

        # 1x1 conv as a single MXU matmul + folded BatchNorm + LeakyReLU(0.1).
        acc = jnp.dot(w_ref[...], cat_ref[...],
                      preferred_element_type=jnp.float32)   # (C, HW)
        y = acc * scale_ref[...] + bias_ref[...]
        y = jnp.where(y > 0, y, NEG_SLOPE * y)
        o_ref[...] = y.astype(o_ref.dtype)

    return kernel


@jax.jit
def sppnet_forward(x, w2d, scale, bias):
    N, C, H, W = x.shape
    HW = H * W
    x_flat = x.reshape(N, C, HW)                       # free metadata reshape
    col_ids = (jnp.arange(HW, dtype=jnp.int32) % W).reshape(1, HW)
    w32 = w2d.astype(jnp.float32)
    scale2 = scale.reshape(C, 1).astype(jnp.float32)
    bias2 = bias.reshape(C, 1).astype(jnp.float32)

    grid_spec = pltpu.PrefetchScalarGridSpec(
        num_scalar_prefetch=0,
        grid=(N,),
        in_specs=[
            pl.BlockSpec((None, C, HW), lambda n: (n, 0, 0)),
            pl.BlockSpec((1, HW), lambda n: (0, 0)),
            pl.BlockSpec((C, 4 * C), lambda n: (0, 0)),
            pl.BlockSpec((C, 1), lambda n: (0, 0)),
            pl.BlockSpec((C, 1), lambda n: (0, 0)),
        ],
        out_specs=pl.BlockSpec((None, C, HW), lambda n: (n, 0, 0)),
        scratch_shapes=[
            pltpu.VMEM((C, (H + 2 * P) * W), jnp.float32),   # vertical-pass pad
            pltpu.VMEM((C, HW + 2 * P), jnp.float32),        # horizontal shifts
            pltpu.VMEM((4 * C, HW), jnp.float32),            # concat for matmul
        ],
    )
    # TODO(synk): for production SPP sizes (e.g. C=512, large H*W) add a
    # channel-tile grid axis so the (4C, HW) concat scratch and I/O blocks stay
    # within the v7x 64 MiB VMEM budget.
    out_flat = pl.pallas_call(
        _make_kernel(C, H, W),
        out_shape=jax.ShapeDtypeStruct((N, C, HW), x.dtype),
        grid_spec=grid_spec,
        compiler_params=pltpu.CompilerParams(
            dimension_semantics=("parallel",)),
    )(x_flat, col_ids, w32, scale2, bias2)
    return out_flat.reshape(N, C, H, W)


def _reference(x, w2d, scale, bias):
    def maxpool_same(x, k):
        p = k // 2
        return lax.reduce_window(
            x, -jnp.inf, lax.max,
            window_dimensions=(1, 1, k, k),
            window_strides=(1, 1, 1, 1),
            padding=((0, 0), (0, 0), (p, p), (p, p)))

    cat = jnp.concatenate(
        [x, maxpool_same(x, 5), maxpool_same(x, 9), maxpool_same(x, 13)],
        axis=1)
    conv = jnp.einsum('oc,nchw->nohw', w2d, cat,
                      precision=lax.Precision.HIGHEST)
    y = conv * scale[None, :, None, None] + bias[None, :, None, None]
    return jnp.where(y > 0, y, NEG_SLOPE * y)


if __name__ == "__main__":
    key = jax.random.PRNGKey(0)
    k_x, k_w, k_g, k_b, k_m, k_v = jax.random.split(key, 6)

    N, C, H, W = 2, 4, 16, 16
    x = jax.random.normal(k_x, (N, C, H, W), jnp.float32)

    # Conv2d(4C -> C, kernel 1, bias=False): weight (C, 4C, 1, 1) -> (C, 4C)
    w2d = 0.1 * jax.random.normal(k_w, (C, 4 * C), jnp.float32)

    # BatchNorm2d(C, eps=1e-4), eval-mode running stats, folded to scale/bias.
    eps = 1e-4
    gamma = 1.0 + 0.1 * jax.random.normal(k_g, (C,), jnp.float32)
    beta = 0.1 * jax.random.normal(k_b, (C,), jnp.float32)
    r_mean = 0.1 * jax.random.normal(k_m, (C,), jnp.float32)
    r_var = jax.random.uniform(k_v, (C,), jnp.float32, 0.5, 1.5)
    scale = gamma / jnp.sqrt(r_var + eps)
    bias = beta - r_mean * scale

    out = jax.block_until_ready(sppnet_forward(x, w2d, scale, bias))
    ref = _reference(x, w2d, scale, bias)

    assert out.shape == (N, C, H, W) and out.dtype == jnp.float32
    err = float(jnp.max(jnp.abs(out - ref)))
    assert jnp.allclose(out, ref, atol=1e-2, rtol=1e-2), err
    print("KERNEL_OK")
</pallas_src>

<mosaic_0001>
module attributes {stable_mosaic.version = 11 : i64} {
  func.func @kernel(%arg0: i32, %arg1: memref<1x4x256xf32, #tpu.memory_space<vmem>>, %arg2: memref<1x256xi32, #tpu.memory_space<vmem>>, %arg3: memref<4x16xf32, #tpu.memory_space<vmem>>, %arg4: memref<4x1xf32, #tpu.memory_space<vmem>>, %arg5: memref<4x1xf32, #tpu.memory_space<vmem>>, %arg6: memref<1x4x256xf32, #tpu.memory_space<vmem>>, %arg7: memref<4x320xf32, #tpu.memory_space<vmem>>, %arg8: memref<4x260xf32, #tpu.memory_space<vmem>>, %arg9: memref<16x256xf32, #tpu.memory_space<vmem>>) attributes {dimension_semantics = [#tpu.dimension_semantics<parallel>], iteration_bounds = array<i64: 2>, scalar_prefetch = 0 : i64, scratch_operands = 3 : i64, tpu.core_type = #tpu.core_type<tc>, window_params = [{transform_indices = @transform_0, window_bounds = array<i64: 1, 4, 256>}, {pipeline_mode = #tpu.pipeline_mode<synchronous>, transform_indices = @transform_1, window_bounds = array<i64: 1, 256>}, {pipeline_mode = #tpu.pipeline_mode<synchronous>, transform_indices = @transform_2, window_bounds = array<i64: 4, 16>}, {pipeline_mode = #tpu.pipeline_mode<synchronous>, transform_indices = @transform_3, window_bounds = array<i64: 4, 1>}, {pipeline_mode = #tpu.pipeline_mode<synchronous>, transform_indices = @transform_4, window_bounds = array<i64: 4, 1>}, {transform_indices = @transform_5, window_bounds = array<i64: 1, 4, 256>}]} {
    %cst = arith.constant 0xFF800000 : f32
    %0 = vector.broadcast %cst : f32 to vector<4x32xf32>
    %c0 = arith.constant 0 : index
    %c0_0 = arith.constant 0 : index
    %1 = vector.load %arg7[%c0, %c0_0] : memref<4x320xf32, #tpu.memory_space<vmem>>, vector<4x32xf32>
    tpu.vector_store %arg7[%c0, %c0_0], %0 {strides = array<i32>} : memref<4x320xf32, #tpu.memory_space<vmem>>, vector<4x32xf32>,
    %cst_1 = arith.constant 0xFF800000 : f32
    %2 = vector.broadcast %cst_1 : f32 to vector<4x32xf32>
    %c0_2 = arith.constant 0 : index
    %c288 = arith.constant 288 : index
    %3 = vector.load %arg7[%c0_2, %c288] : memref<4x320xf32, #tpu.memory_space<vmem>>, vector<4x32xf32>
    tpu.vector_store %arg7[%c0_2, %c288], %2 {strides = array<i32>} : memref<4x320xf32, #tpu.memory_space<vmem>>, vector<4x32xf32>,
    %cst_3 = arith.constant 0xFF800000 : f32
    %4 = vector.broadcast %cst_3 : f32 to vector<4x2xf32>
    %c0_4 = arith.constant 0 : index
    %c0_5 = arith.constant 0 : index
    %5 = vector.load %arg8[%c0_4, %c0_5] : memref<4x260xf32, #tpu.memory_space<vmem>>, vector<4x2xf32>
    tpu.vector_store %arg8[%c0_4, %c0_5], %4 {strides = array<i32>} : memref<4x260xf32, #tpu.memory_space<vmem>>, vector<4x2xf32>,
    %cst_6 = arith.constant 0xFF800000 : f32
    %6 = vector.broadcast %cst_6 : f32 to vector<4x2xf32>
    %c0_7 = arith.constant 0 : index
    %c258 = arith.constant 258 : index
    %7 = vector.load %arg8[%c0_7, %c258] : memref<4x260xf32, #tpu.memory_space<vmem>>, vector<4x2xf32>
    tpu.vector_store %arg8[%c0_7, %c258], %6 {strides = array<i32>} : memref<4x260xf32, #tpu.memory_space<vmem>>, vector<4x2xf32>,
    %c0_8 = arith.constant 0 : index
    %c0_9 = arith.constant 0 : index
    %8 = vector.load %arg2[%c0_8, %c0_9] : memref<1x256xi32, #tpu.memory_space<vmem>>, vector<1x256xi32>
    %c0_10 = arith.constant 0 : index
    %c0_11 = arith.constant 0 : index
    %c0_12 = arith.constant 0 : index
    %9 = vector.load %arg1[%c0_10, %c0_11, %c0_12] : memref<1x4x256xf32, #tpu.memory_space<vmem>>, vector<1x4x256xf32>
    %10 = vector.shape_cast %9 : vector<1x4x256xf32> to vector<4x256xf32>
    %c0_13 = arith.constant 0 : index
    %c32 = arith.constant 32 : index
    %11 = vector.load %arg7[%c0_13, %c32] : memref<4x320xf32, #tpu.memory_space<vmem>>, vector<4x256xf32>
    tpu.vector_store %arg7[%c0_13, %c32], %10 {strides = array<i32>} : memref<4x320xf32, #tpu.memory_space<vmem>>, vector<4x256xf32>,
    %c0_14 = arith.constant 0 : index
    %c0_15 = arith.constant 0 : index
    %12 = vector.load %arg7[%c0_14, %c0_15] : memref<4x320xf32, #tpu.memory_space<vmem>>, vector<4x256xf32>
    %c0_16 = arith.constant 0 : index
    %c16 = arith.constant 16 : index
    %13 = vector.load %arg7[%c0_16, %c16] : memref<4x320xf32, #tpu.memory_space<vmem>>, vector<4x256xf32>
    %14 = arith.maximumf %12, %13 : vector<4x256xf32>
    %c0_17 = arith.constant 0 : index
    %c32_18 = arith.constant 32 : index
    %15 = vector.load %arg7[%c0_17, %c32_18] : memref<4x320xf32, #tpu.memory_space<vmem>>, vector<4x256xf32>
    %16 = arith.maximumf %14, %15 : vector<4x256xf32>
    %c0_19 = arith.constant 0 : index
    %c48 = arith.constant 48 : index
    %17 = vector.load %arg7[%c0_19, %c48] : memref<4x320xf32, #tpu.memory_space<vmem>>, vector<4x256xf32>
    %18 = arith.maximumf %16, %17 : vector<4x256xf32>
    %c0_20 = arith.constant 0 : index
    %c64 = arith.constant 64 : index
    %19 = vector.load %arg7[%c0_20, %c64] : memref<4x320xf32, #tpu.memory_space<vmem>>, vector<4x256xf32>
    %20 = arith.maximumf %18, %19 : vector<4x256xf32>
    %c0_21 = arith.constant 0 : index
    %c2 = arith.constant 2 : index
    %21 = vector.load %arg8[%c0_21, %c2] : memref<4x260xf32, #tpu.memory_space<vmem>>, vector<4x256xf32>
    tpu.vector_store %arg8[%c0_21, %c2], %20 {strides = array<i32>} : memref<4x260xf32, #tpu.memory_space<vmem>>, vector<4x256xf32>,
    %c0_22 = arith.constant 0 : index
    %c3 = arith.constant 3 : index
    %22 = vector.load %arg8[%c0_22, %c3] : memref<4x260xf32, #tpu.memory_space<vmem>>, vector<4x256xf32>
    %c15_i32 = arith.constant 15 : i32
    %23 = vector.broadcast %c15_i32 : i32 to vector<1x256xi32>
    %24 = arith.cmpi slt, %8, %23 : vector<1x256xi32>
    %cst_23 = arith.constant 0xFF800000 : f32
    %25 = vector.shape_cast %24 : vector<1x256xi1> to vector<1x256xi1>
    %26 = vector.broadcast %25 : vector<1x256xi1> to vector<4x256xi1>
    %27 = vector.broadcast %cst_23 : f32 to vector<4x256xf32>
    %28 = arith.select %26, %22, %27 : vector<4x256xi1>, vector<4x256xf32>
    %c0_24 = arith.constant 0 : index
    %c1 = arith.constant 1 : index
    %29 = vector.load %arg8[%c0_24, %c1] : memref<4x260xf32, #tpu.memory_space<vmem>>, vector<4x256xf32>
    %c1_i32 = arith.constant 1 : i32
    %30 = vector.broadcast %c1_i32 : i32 to vector<1x256xi32>
    %31 = arith.cmpi sge, %8, %30 : vector<1x256xi32>
    %cst_25 = arith.constant 0xFF800000 : f32
    %32 = vector.shape_cast %31 : vector<1x256xi1> to vector<1x256xi1>
    %33 = vector.broadcast %32 : vector<1x256xi1> to vector<4x256xi1>
    %34 = vector.broadcast %cst_25 : f32 to vector<4x256xf32>
    %35 = arith.select %33, %29, %34 : vector<4x256xi1>, vector<4x256xf32>
    %36 = arith.maximumf %35, %28 : vector<4x256xf32>
    %37 = arith.maximumf %20, %36 : vector<4x256xf32>
    %c0_26 = arith.constant 0 : index
    %c4 = arith.constant 4 : index
    %38 = vector.load %arg8[%c0_26, %c4] : memref<4x260xf32, #tpu.memory_space<vmem>>, vector<4x256xf32>
    %c14_i32 = arith.constant 14 : i32
    %39 = vector.broadcast %c14_i32 : i32 to vector<1x256xi32>
    %40 = arith.cmpi slt, %8, %39 : vector<1x256xi32>
    %cst_27 = arith.constant 0xFF800000 : f32
    %41 = vector.shape_cast %40 : vector<1x256xi1> to vector<1x256xi1>
    %42 = vector.broadcast %41 : vector<1x256xi1> to vector<4x256xi1>
    %43 = vector.broadcast %cst_27 : f32 to vector<4x256xf32>
    %44 = arith.select %42, %38, %43 : vector<4x256xi1>, vector<4x256xf32>
    %c0_28 = arith.constant 0 : index
    %c0_29 = arith.constant 0 : index
    %45 = vector.load %arg8[%c0_28, %c0_29] : memref<4x260xf32, #tpu.memory_space<vmem>>, vector<4x256xf32>
    %c2_i32 = arith.constant 2 : i32
    %46 = vector.broadcast %c2_i32 : i32 to vector<1x256xi32>
    %47 = arith.cmpi sge, %8, %46 : vector<1x256xi32>
    %cst_30 = arith.constant 0xFF800000 : f32
    %48 = vector.shape_cast %47 : vector<1x256xi1> to vector<1x256xi1>
    %49 = vector.broadcast %48 : vector<1x256xi1> to vector<4x256xi1>
    %50 = vector.broadcast %cst_30 : f32 to vector<4x256xf32>
    %51 = arith.select %49, %45, %50 : vector<4x256xi1>, vector<4x256xf32>
    %52 = arith.maximumf %51, %44 : vector<4x256xf32>
    %53 = arith.maximumf %37, %52 : vector<4x256xf32>
    %c0_31 = arith.constant 0 : index
    %c32_32 = arith.constant 32 : index
    %54 = vector.load %arg7[%c0_31, %c32_32] : memref<4x320xf32, #tpu.memory_space<vmem>>, vector<4x256xf32>
    tpu.vector_store %arg7[%c0_31, %c32_32], %53 {strides = array<i32>} : memref<4x320xf32, #tpu.memory_space<vmem>>, vector<4x256xf32>,
    %c0_33 = arith.constant 0 : index
    %c0_34 = arith.constant 0 : index
    %55 = vector.load %arg7[%c0_33, %c0_34] : memref<4x320xf32, #tpu.memory_space<vmem>>, vector<4x256xf32>
    %c0_35 = arith.constant 0 : index
    %c16_36 = arith.constant 16 : index
    %56 = vector.load %arg7[%c0_35, %c16_36] : memref<4x320xf32, #tpu.memory_space<vmem>>, vector<4x256xf32>
    %57 = arith.maximumf %55, %56 : vector<4x256xf32>
    %c0_37 = arith.constant 0 : index
    %c32_38 = arith.constant 32 : index
    %58 = vector.load %arg7[%c0_37, %c32_38] : memref<4x320xf32, #tpu.memory_space<vmem>>, vector<4x256xf32>
    %59 = arith.maximumf %57, %58 : vector<4x256xf32>
    %c0_39 = arith.constant 0 : index
    %c48_40 = arith.constant 48 : index
    %60 = vector.load %arg7[%c0_39, %c48_40] : memref<4x320xf32, #tpu.memory_space<vmem>>, vector<4x256xf32>
    %61 = arith.maximumf %59, %60 : vector<4x256xf32>
    %c0_41 = arith.constant 0 : index
    %c64_42 = arith.constant 64 : index
    %62 = vector.load %arg7[%c0_41, %c64_42] : memref<4x320xf32, #tpu.memory_space<vmem>>, vector<4x256xf32>
    %63 = arith.maximumf %61, %62 : vector<4x256xf32>
    %c0_43 = arith.constant 0 : index
    %c2_44 = arith.constant 2 : index
    %64 = vector.load %arg8[%c0_43, %c2_44] : memref<4x260xf32, #tpu.memory_space<vmem>>, vector<4x256xf32>
    tpu.vector_store %arg8[%c0_43, %c2_44], %63 {strides = array<i32>} : memref<4x260xf32, #tpu.memory_space<vmem>>, vector<4x256xf32>,
    %c0_45 = arith.constant 0 : index
    %c3_46 = arith.constant 3 : index
    %65 = vector.load %arg8[%c0_45, %c3_46] : memref<4x260xf32, #tpu.memory_space<vmem>>, vector<4x256xf32>
    %c15_i32_47 = arith.constant 15 : i32
    %66 = vector.broadcast %c15_i32_47 : i32 to vector<1x256xi32>
    %67 = arith.cmpi slt, %8, %66 : vector<1x256xi32>
    %cst_48 = arith.constant 0xFF800000 : f32
    %68 = vector.shape_cast %67 : vector<1x256xi1> to vector<1x256xi1>
    %69 = vector.broadcast %68 : vector<1x256xi1> to vector<4x256xi1>
    %70 = vector.broadcast %cst_48 : f32 to vector<4x256xf32>
    %71 = arith.select %69, %65, %70 : vector<4x256xi1>, vector<4x256xf32>
    %c0_49 = arith.constant 0 : index
    %c1_50 = arith.constant 1 : index
    %72 = vector.load %arg8[%c0_49, %c1_50] : memref<4x260xf32, #tpu.memory_space<vmem>>, vector<4x256xf32>
    %c1_i32_51 = arith.constant 1 : i32
    %73 = vector.broadcast %c1_i32_51 : i32 to vector<1x256xi32>
    %74 = arith.cmpi sge, %8, %73 : vector<1x256xi32>
    %cst_52 = arith.constant 0xFF800000 : f32
    %75 = vector.shape_cast %74 : vector<1x256xi1> to vector<1x256xi1>
    %76 = vector.broadcast %75 : vector<1x256xi1> to vector<4x256xi1>
    %77 = vector.broadcast %cst_52 : f32 to vector<4x256xf32>
    %78 = arith.select %76, %72, %77 : vector<4x256xi1>, vector<4x256xf32>
    %79 = arith.maximumf %78, %71 : vector<4x256xf32>
    %80 = arith.maximumf %63, %79 : vector<4x256xf32>
    %c0_53 = arith.constant 0 : index
    %c4_54 = arith.constant 4 : index
    %81 = vector.load %arg8[%c0_53, %c4_54] : memref<4x260xf32, #tpu.memory_space<vmem>>, vector<4x256xf32>
    %c14_i32_55 = arith.constant 14 : i32
    %82 = vector.broadcast %c14_i32_55 : i32 to vector<1x256xi32>
    %83 = arith.cmpi slt, %8, %82 : vector<1x256xi32>
    %cst_56 = arith.constant 0xFF800000 : f32
    %84 = vector.shape_cast %83 : vector<1x256xi1> to vector<1x256xi1>
    %85 = vector.broadcast %84 : vector<1x256xi1> to vector<4x256xi1>
    %86 = vector.broadcast %cst_56 : f32 to vector<4x256xf32>
    %87 = arith.select %85, %81, %86 : vector<4x256xi1>, vector<4x256xf32>
    %c0_57 = arith.constant 0 : index
    %c0_58 = arith.constant 0 : index
    %88 = vector.load %arg8[%c0_57, %c0_58] : memref<4x260xf32, #tpu.memory_space<vmem>>, vector<4x256xf32>
    %c2_i32_59 = arith.constant 2 : i32
    %89 = vector.broadcast %c2_i32_59 : i32 to vector<1x256xi32>
    %90 = arith.cmpi sge, %8, %89 : vector<1x256xi32>
    %cst_60 = arith.constant 0xFF800000 : f32
    %91 = vector.shape_cast %90 : vector<1x256xi1> to vector<1x256xi1>
    %92 = vector.broadcast %91 : vector<1x256xi1> to vector<4x256xi1>
    %93 = vector.broadcast %cst_60 : f32 to vector<4x256xf32>
    %94 = arith.select %92, %88, %93 : vector<4x256xi1>, vector<4x256xf32>
    %95 = arith.maximumf %94, %87 : vector<4x256xf32>
    %96 = arith.maximumf %80, %95 : vector<4x256xf32>
    %c0_61 = arith.constant 0 : index
    %c32_62 = arith.constant 32 : index
    %97 = vector.load %arg7[%c0_61, %c32_62] : memref<4x320xf32, #tpu.memory_space<vmem>>, vector<4x256xf32>
    tpu.vector_store %arg7[%c0_61, %c32_62], %96 {strides = array<i32>} : memref<4x320xf32, #tpu.memory_space<vmem>>, vector<4x256xf32>,
    %c0_63 = arith.constant 0 : index
    %c0_64 = arith.constant 0 : index
    %98 = vector.load %arg7[%c0_63, %c0_64] : memref<4x320xf32, #tpu.memory_space<vmem>>, vector<4x256xf32>
    %c0_65 = arith.constant 0 : index
    %c16_66 = arith.constant 16 : index
    %99 = vector.load %arg7[%c0_65, %c16_66] : memref<4x320xf32, #tpu.memory_space<vmem>>, vector<4x256xf32>
    %100 = arith.maximumf %98, %99 : vector<4x256xf32>
    %c0_67 = arith.constant 0 : index
    %c32_68 = arith.constant 32 : index
    %101 = vector.load %arg7[%c0_67, %c32_68] : memref<4x320xf32, #tpu.memory_space<vmem>>, vector<4x256xf32>
    %102 = arith.maximumf %100, %101 : vector<4x256xf32>
    %c0_69 = arith.constant 0 : index
    %c48_70 = arith.constant 48 : index
    %103 = vector.load %arg7[%c0_69, %c48_70] : memref<4x320xf32, #tpu.memory_space<vmem>>, vector<4x256xf32>
    %104 = arith.maximumf %102, %103 : vector<4x256xf32>
    %c0_71 = arith.constant 0 : index
    %c64_72 = arith.constant 64 : index
    %105 = vector.load %arg7[%c0_71, %c64_72] : memref<4x320xf32, #tpu.memory_space<vmem>>, vector<4x256xf32>
    %106 = arith.maximumf %104, %105 : vector<4x256xf32>
    %c0_73 = arith.constant 0 : index
    %c2_74 = arith.constant 2 : index
    %107 = vector.load %arg8[%c0_73, %c2_74] : memref<4x260xf32, #tpu.memory_space<vmem>>, vector<4x256xf32>
    tpu.vector_store %arg8[%c0_73, %c2_74], %106 {strides = array<i32>} : memref<4x260xf32, #tpu.memory_space<vmem>>, vector<4x256xf32>,
    %c0_75 = arith.constant 0 : index
    %c3_76 = arith.constant 3 : index
    %108 = vector.load %arg8[%c0_75, %c3_76] : memref<4x260xf32, #tpu.memory_space<vmem>>, vector<4x256xf32>
    %c15_i32_77 = arith.constant 15 : i32
    %109 = vector.broadcast %c15_i32_77 : i32 to vector<1x256xi32>
    %110 = arith.cmpi slt, %8, %109 : vector<1x256xi32>
    %cst_78 = arith.constant 0xFF800000 : f32
    %111 = vector.shape_cast %110 : vector<1x256xi1> to vector<1x256xi1>
    %112 = vector.broadcast %111 : vector<1x256xi1> to vector<4x256xi1>
    %113 = vector.broadcast %cst_78 : f32 to vector<4x256xf32>
    %114 = arith.select %112, %108, %113 : vector<4x256xi1>, vector<4x256xf32>
    %c0_79 = arith.constant 0 : index
    %c1_80 = arith.constant 1 : index
    %115 = vector.load %arg8[%c0_79, %c1_80] : memref<4x260xf32, #tpu.memory_space<vmem>>, vector<4x256xf32>
    %c1_i32_81 = arith.constant 1 : i32
    %116 = vector.broadcast %c1_i32_81 : i32 to vector<1x256xi32>
    %117 = arith.cmpi sge, %8, %116 : vector<1x256xi32>
    %cst_82 = arith.constant 0xFF800000 : f32
    %118 = vector.shape_cast %117 : vector<1x256xi1> to vector<1x256xi1>
    %119 = vector.broadcast %118 : vector<1x256xi1> to vector<4x256xi1>
    %120 = vector.broadcast %cst_82 : f32 to vector<4x256xf32>
    %121 = arith.select %119, %115, %120 : vector<4x256xi1>, vector<4x256xf32>
    %122 = arith.maximumf %121, %114 : vector<4x256xf32>
    %123 = arith.maximumf %106, %122 : vector<4x256xf32>
    %c0_83 = arith.constant 0 : index
    %c4_84 = arith.constant 4 : index
    %124 = vector.load %arg8[%c0_83, %c4_84] : memref<4x260xf32, #tpu.memory_space<vmem>>, vector<4x256xf32>
    %c14_i32_85 = arith.constant 14 : i32
    %125 = vector.broadcast %c14_i32_85 : i32 to vector<1x256xi32>
    %126 = arith.cmpi slt, %8, %125 : vector<1x256xi32>
    %cst_86 = arith.constant 0xFF800000 : f32
    %127 = vector.shape_cast %126 : vector<1x256xi1> to vector<1x256xi1>
    %128 = vector.broadcast %127 : vector<1x256xi1> to vector<4x256xi1>
    %129 = vector.broadcast %cst_86 : f32 to vector<4x256xf32>
    %130 = arith.select %128, %124, %129 : vector<4x256xi1>, vector<4x256xf32>
    %c0_87 = arith.constant 0 : index
    %c0_88 = arith.constant 0 : index
    %131 = vector.load %arg8[%c0_87, %c0_88] : memref<4x260xf32, #tpu.memory_space<vmem>>, vector<4x256xf32>
    %c2_i32_89 = arith.constant 2 : i32
    %132 = vector.broadcast %c2_i32_89 : i32 to vector<1x256xi32>
    %133 = arith.cmpi sge, %8, %132 : vector<1x256xi32>
    %cst_90 = arith.constant 0xFF800000 : f32
    %134 = vector.shape_cast %133 : vector<1x256xi1> to vector<1x256xi1>
    %135 = vector.broadcast %134 : vector<1x256xi1> to vector<4x256xi1>
    %136 = vector.broadcast %cst_90 : f32 to vector<4x256xf32>
    %137 = arith.select %135, %131, %136 : vector<4x256xi1>, vector<4x256xf32>
    %138 = arith.maximumf %137, %130 : vector<4x256xf32>
    %139 = arith.maximumf %123, %138 : vector<4x256xf32>
    %c0_91 = arith.constant 0 : index
    %c0_92 = arith.constant 0 : index
    %140 = vector.load %arg9[%c0_91, %c0_92] : memref<16x256xf32, #tpu.memory_space<vmem>>, vector<4x256xf32>
    tpu.vector_store %arg9[%c0_91, %c0_92], %10 {strides = array<i32>} : memref<16x256xf32, #tpu.memory_space<vmem>>, vector<4x256xf32>,
    %c4_93 = arith.constant 4 : index
    %c0_94 = arith.constant 0 : index
    %141 = vector.load %arg9[%c4_93, %c0_94] : memref<16x256xf32, #tpu.memory_space<vmem>>, vector<4x256xf32>
    tpu.vector_store %arg9[%c4_93, %c0_94], %53 {strides = array<i32>} : memref<16x256xf32, #tpu.memory_space<vmem>>, vector<4x256xf32>,
    %c8 = arith.constant 8 : index
    %c0_95 = arith.constant 0 : index
    %142 = vector.load %arg9[%c8, %c0_95] : memref<16x256xf32, #tpu.memory_space<vmem>>, vector<4x256xf32>
    tpu.vector_store %arg9[%c8, %c0_95], %96 {strides = array<i32>} : memref<16x256xf32, #tpu.memory_space<vmem>>, vector<4x256xf32>,
    %c12 = arith.constant 12 : index
    %c0_96 = arith.constant 0 : index
    %143 = vector.load %arg9[%c12, %c0_96] : memref<16x256xf32, #tpu.memory_space<vmem>>, vector<4x256xf32>
    tpu.vector_store %arg9[%c12, %c0_96], %139 {strides = array<i32>} : memref<16x256xf32, #tpu.memory_space<vmem>>, vector<4x256xf32>,
    %c0_97 = arith.constant 0 : index
    %c0_98 = arith.constant 0 : index
    %144 = vector.load %arg3[%c0_97, %c0_98] : memref<4x16xf32, #tpu.memory_space<vmem>>, vector<4x16xf32>
    %c0_99 = arith.constant 0 : index
    %c0_100 = arith.constant 0 : index
    %145 = vector.load %arg9[%c0_99, %c0_100] : memref<16x256xf32, #tpu.memory_space<vmem>>, vector<16x256xf32>
    %cst_101 = arith.constant dense<0.000000e+00> : vector<4x256xf32>
    %146 = tpu.matmul %144, %145, %cst_101 {dimension_numbers = #tpu.dot_dimension_numbers<[1], [0], [0], [1], [0, 0, 1, 1], [], []>} : vector<4x16xf32>, vector<16x256xf32>, vector<4x256xf32> -> vector<4x256xf32>
    %c0_102 = arith.constant 0 : index
    %c0_103 = arith.constant 0 : index
    %147 = vector.load %arg4[%c0_102, %c0_103] : memref<4x1xf32, #tpu.memory_space<vmem>>, vector<4x1xf32>
    %148 = vector.broadcast %147 : vector<4x1xf32> to vector<4x256xf32>
    %149 = arith.mulf %146, %148 : vector<4x256xf32>
    %c0_104 = arith.constant 0 : index
    %c0_105 = arith.constant 0 : index
    %150 = vector.load %arg5[%c0_104, %c0_105] : memref<4x1xf32, #tpu.memory_space<vmem>>, vector<4x1xf32>
    %151 = vector.broadcast %150 : vector<4x1xf32> to vector<4x256xf32>
    %152 = arith.addf %149, %151 : vector<4x256xf32>
    %cst_106 = arith.constant 0.000000e+00 : f32
    %153 = vector.broadcast %cst_106 : f32 to vector<4x256xf32>
    %154 = arith.cmpf ogt, %152, %153 : vector<4x256xf32>
    %cst_107 = arith.constant 1.000000e-01 : f32
    %155 = vector.broadcast %cst_107 : f32 to vector<4x256xf32>
    %156 = arith.mulf %155, %152 : vector<4x256xf32>
    %157 = arith.select %154, %152, %156 : vector<4x256xi1>, vector<4x256xf32>
    %c0_108 = arith.constant 0 : index
    %c0_109 = arith.constant 0 : index
    %c0_110 = arith.constant 0 : index
    %158 = vector.load %arg6[%c0_108, %c0_109, %c0_110] : memref<1x4x256xf32, #tpu.memory_space<vmem>>, vector<1x4x256xf32>
    %159 = vector.shape_cast %158 : vector<1x4x256xf32> to vector<4x256xf32>
    %160 = vector.shape_cast %157 : vector<4x256xf32> to vector<1x4x256xf32>
    tpu.vector_store %arg6[%c0_108, %c0_109, %c0_110], %160 {strides = array<i32>} : memref<1x4x256xf32, #tpu.memory_space<vmem>>, vector<1x4x256xf32>,
    return
  }
  func.func @transform_0(%arg0: i32) -> (i32, i32, i32) {
    %c0_i32 = arith.constant 0 : i32
    %c0_i32_0 = arith.constant 0 : i32
    %c0_i32_1 = arith.constant 0 : i32
    return %arg0, %c0_i32, %c0_i32_0 : i32, i32, i32
  }
  func.func @transform_1(%arg0: i32) -> (i32, i32) {
    %c0_i32 = arith.constant 0 : i32
    %c0_i32_0 = arith.constant 0 : i32
    %c0_i32_1 = arith.constant 0 : i32
    return %c0_i32, %c0_i32_0 : i32, i32
  }
  func.func @transform_2(%arg0: i32) -> (i32, i32) {
    %c0_i32 = arith.constant 0 : i32
    %c0_i32_0 = arith.constant 0 : i32
    %c0_i32_1 = arith.constant 0 : i32
    return %c0_i32, %c0_i32_0 : i32, i32
  }
  func.func @transform_3(%arg0: i32) -> (i32, i32) {
    %c0_i32 = arith.constant 0 : i32
    %c0_i32_0 = arith.constant 0 : i32
    %c0_i32_1 = arith.constant 0 : i32
    return %c0_i32, %c0_i32_0 : i32, i32
  }
  func.func @transform_4(%arg0: i32) -> (i32, i32) {
    %c0_i32 = arith.constant 0 : i32
    %c0_i32_0 = arith.constant 0 : i32
    %c0_i32_1 = arith.constant 0 : i32
    return %c0_i32, %c0_i32_0 : i32, i32
  }
  func.func @transform_5(%arg0: i32) -> (i32, i32, i32) {
    %c0_i32 = arith.constant 0 : i32
    %c0_i32_0 = arith.constant 0 : i32
    %c0_i32_1 = arith.constant 0 : i32
    return %arg0, %c0_i32, %c0_i32_0 : i32, i32, i32
  }
}

</mosaic_0001>

<bundles_post_ra>
// kernel: sppnet_forward.1
= control target key start
LH: loop header
LB: loop body
LE: loop exit
PB: predicated region body
PF: predicated region fallthrough
CT: control target
= control target key end

     0   :  { %s931_s18 = smov 0   ;;  %s1200_s0 = inlined_call_operand.vmem [shape: f32[2,4,256], index: 0, kind: input, shape index: {}]   ;;  %s1201_s1 = inlined_call_operand.vmem [shape: s32[1,256], index: 1, kind: input, shape index: {}]   ;;  %s1202_s2 = inlined_call_operand.vmem [shape: f32[4,16], index: 2, kind: input, shape index: {}]   ;;  %s1203_s3 = inlined_call_operand.vmem [shape: f32[4,1], index: 3, kind: input, shape index: {}]   ;;  %s1204_s4 = inlined_call_operand.vmem [shape: f32[4,1], index: 4, kind: input, shape index: {}]   ;;  %s1205_s5 = inlined_call_operand.vmem [shape: f32[2,4,256], index: 5, kind: output, shape index: {}]  }
   0x1 LB: > { %s837_s19 = sadd.s32 4294967295, %s887_s18   ;;  %p841_p0 = scmp.ge.s32.totalorder %s887_s18, 1  ;;  %s887_s18 = sphi %s931_s18, %s15_s18  }
   0x2   : > { %p187_p1 = scmp.lt.s32.totalorder %s887_s18, 3 }
   0x4   : > { %p188_p2 = pnand %p841_p0, %p187_p1 }
   0x5   : > { %p215_p3 = scmp.lt.s32.totalorder (!%p188_p2), %s837_s19, 1  ;;  %vm1212_vm0 = vcmask (!%p188_p2), 257024   ;;  %vm227_vm1 = vcmask (!%p188_p2), 519424   ;;  %v889_v0 = vmov (!%p188_p2), -inf   ;;  %s890_s24 = smov (!%p188_p2), 32   ;;  %vm243_vm2 = vcmask (!%p188_p2), 1043712  }
   0x6   : > { %191 = sbr.rel (%p188_p2) target bundleno = 1823 (0x71f), region = 40  ;;  %226 = vst.msk [vmem:[#allocation2] sm:$0xf] (!%p188_p2), %vm1212_vm0, %v889_v0  ;;  %vm244_vm3 = vcmask (!%p188_p2), 1047556   ;;  %vm1213_vm4 = vcmask (!%p188_p2), 261120   ;;  %s891_s25 = smov (!%p188_p2), 96   ;;  %v313_v45 = vlaneseq (!%p188_p2) }
   0x7   : > { %228 = vst.msk [vmem:[#allocation2 + $0x8] sm:$0xf] (!%p188_p2), %vm227_vm1, %v889_v0  ;;  %vm950_vm5 = vmor (!%p188_p2), %vm244_vm3, %vm243_vm2  ;;  %s892_s26 = smov (!%p188_p2), 112   ;;  %vm1206_vm6 = vcmask (!%p188_p2), 11264   ;;  %vm231_vm7 = vcmask (!%p188_p2), 27664   ;;  %s893_s27 = smov (!%p188_p2), 80  }
   0x8   : > { %230 = vst.msk [vmem:[#allocation3] sm:$0xf] (!%p188_p2), %vm1206_vm6, %v889_v0  ;;  %s894_s28 = smov (!%p188_p2), 64   ;;  %vm258_vm8 = vcmask (!%p188_p2), 1043456   ;;  %vm1215_vm9 = vcmask (!%p188_p2), 916480   ;;  %vm1214_vm10 = vcmask (!%p188_p2), 785408  }
   0x9   : > { %232 = vst.msk [vmem:[#allocation3 + $0x8] sm:$0xf] (!%p188_p2), %vm231_vm7, %v889_v0  ;;  %vm1209_vm11 = vcmask (!%p188_p2), 654336   ;;  %vm1208_vm12 = vcmask (!%p188_p2), 523264   ;;  %v895_v33 = vmov (!%p188_p2), 0   ;;  %s896_s29 = smov (!%p188_p2), 2  }
   0xa   : > { %875 = vset.pattern.permute.xlu1 (!%p188_p2), %v895_v33  ;;  %876 = vset.pattern.permute.xlu0 (!%p188_p2), %v895_v33  ;;  %vm305_vm13 = vcmask (!%p188_p2), 1043472   ;;  %vm1207_vm14 = vcmask (!%p188_p2), 15360   ;;  %s897_s30 = smov (!%p188_p2), 127   ;;  %s898_s6 = smov (!%p188_p2), 125   ;;  %v233_v46 = vld [vmem:[%s1201_s1] sm:$0x3] (!%p188_p2) }
   0xb   : > { %vm980_vm15 = vmor (!%p188_p2), %vm244_vm3, %vm305_vm13  ;;  %s899_s7 = smov (!%p188_p2), 124   ;;  %vm311_vm1 = vcmp.lt.s32.totalorder (!%p188_p2), %v233_v46, 15  ;;  %v314_v47 = vshrl.u32 (!%p188_p2), %v313_v45, 7  ;;  %vm339_vm2 = vcmp.ge.s32.totalorder (!%p188_p2), %v233_v46, 1  ;;  %vm396_vm3 = vcmp.ge.s32.totalorder (!%p188_p2), %v233_v46, 2 }
   0xc   : > { %v312_v50 = vsel (!%p188_p2), %vm311_vm1, 1, %v895_v33  ;;  %v340_v52 = vsel (!%p188_p2), %vm339_vm2, 1, %v895_v33  ;;  %vm371_vm7 = vcmp.lt.s32.totalorder (!%p188_p2), %v233_v46, 14  ;;  %v397_v57 = vsel (!%p188_p2), %vm396_vm3, 1, %v895_v33 }
   0xd   : > { %s1257_s19 = smov (!%p215_p3, %s837_s19), 1  ;;  %v315_v51 = vsub.s32 0, %v314_v47  ;;  %v319_v55 = vsub.s32 1, %v314_v47  ;;  %v372_v60 = vsel %vm371_vm7, 1, %v895_v33  ;;  %vm1211_vm13 = vcmask 1022976  }
   0xe   : > { %s849_s20 = sshll.u32 %s1257_s19, 3  ;;  %vm1210_vm3 = vcmask 1039360   ;;  %vm389_vm7 = vcmask 1014784   ;;  %v900_v39 = vmov 0.0  }
   0xf   : > { %s219_s23 = scalar_lea.vmem %s1200_s0, %s849_s20  ;;  %v316_v56 = vrot.slane %v312_v50, %v315_v51  ;;  %v320_v58 = vrot.slane %v312_v50, %v319_v55  ;;  %v344_v59 = vrot.slane %v340_v52, %v315_v51  ;;  %v348_v61 = vrot.slane %v340_v52, %v319_v55  ;;  %748 = vmatprep.mubr.f32.mxu0 %v900_v39  ;;  %s224_s21 = scalar_lea.vmem %s1205_s5, %s849_s20 }
  0x10   : > { %v234_v1 = vld [vmem:[%s219_s23] sm:$0xff]  ;;  %v401_v0 = vrot.slane %v397_v57, %v315_v51 }
  0x11   : > { %236 = vrot.lane.b32.xlu0 %v234_v1, %s890_s24  ;;  %v658_v2 = vcombine.high %v234_v1, %v234_v1  ;;  %660 = vst [vmem:[#allocation4] sm:$0xf] %v234_v1  ;;  %vm1016_vm1 = vcmp.eq.s32.totalorder %v320_v58, 1  ;;  %vm1020_vm2 = vcmp.eq.s32.totalorder %v344_v59, 1 }
  0x13   : > { %661 = vst [vmem:[#allocation4 + $0x8] sm:$0xf] %v658_v2  ;;  %v376_v2 = vrot.slane %v372_v60, %v315_v51 }
  0x83   : > { %v237_v3 = vpop.permute.xlu0 %236 }
  0x84   : > { %v238_v5 = vrot.slane %v237_v3, 4 }
  0x86   : > { %v240_v6 = vsel %vm1213_vm4, %v238_v5, %v237_v3  ;;  %247 = vst.msk [vmem:[#allocation2 + $0x8] sm:$0xf] %vm1212_vm0, %v238_v5  ;;  %v405_v3 = vrot.slane %v397_v57, %v319_v55 }
  0x87   : > { %246 = vst.msk [vmem:[#allocation2] sm:$0xff] %vm950_vm5, %v240_v6 }
  0x8d   : > { %v249_v7 = vld [vmem:[#allocation2 + $0x8] sm:$0xf] }
  0x8e   : > { %266 = vrot.lane.b32.xlu0 %v249_v7, %s891_s25  ;;  %254 = vrot.lane.b32.xlu1 %v249_v7, %s892_s26  ;;  %v248_v8 = vld [vmem:[#allocation2] sm:$0xff] }
  0x92   : > { %264 = vrot.lane.b32.xlu1 %v248_v8, %s891_s25  ;;  %252 = vrot.lane.b32.xlu0 %v248_v8, %s892_s26 }
  0x96   : > { %275 = vrot.lane.b32.xlu1 %v248_v8, %s893_s27  ;;  %277 = vrot.lane.b32.xlu0 %v249_v7, %s893_s27 }
  0x9a   : > { %286 = vrot.lane.b32.xlu1 %v248_v8, %s894_s28  ;;  %288 = vrot.lane.b32.xlu0 %v249_v7, %s894_s28 }
 0x100   : > { %v267_v9 = vpop.permute.xlu0 %266  ;;  %v255_v10 = vpop.permute.xlu1 %254 }
 0x101   : > { %v269_v13 = vrot.slane %v267_v9, 4  ;;  %v257_v14 = vrot.slane %v255_v10, 4  ;;  %v380_v10 = vrot.slane %v372_v60, %v319_v55 }
 0x104   : > { %v265_v11 = vpop.permute.xlu1 %264  ;;  %v253_v12 = vpop.permute.xlu0 %252 }
 0x105   : > { %v268_v15 = vrot.slane %v265_v11, 4  ;;  %v256_v16 = vrot.slane %v253_v12, 4 }
 0x107   : > { %v270_v17 = vsel %vm258_vm8, %v268_v15, %v269_v13  ;;  %v259_v18 = vsel %vm258_vm8, %v256_v16, %v257_v14 }
 0x108   : > { %v261_v19 = vsel %vm1215_vm9, %v253_v12, %v259_v18  ;;  %v276_v20 = vpop.permute.xlu1 %275  ;;  %v278_v21 = vpop.permute.xlu0 %277  ;;  %v272_v25 = vsel %vm1214_vm10, %v265_v11, %v270_v17 }
 0x109   : > { %v263_v22 = vmax.f32 %v248_v8, %v261_v19  ;;  %v279_v23 = vrot.slane %v276_v20, 4  ;;  %v280_v24 = vrot.slane %v278_v21, 4 }
 0x10b   : > { %v274_v26 = vmax.f32 %v263_v22, %v272_v25  ;;  %v281_v27 = vsel %vm258_vm8, %v279_v23, %v280_v24  ;;  %v675_v24 = vld [vmem:[%s1202_s2] sm:$0xf] }
 0x10c   : > { %v287_v28 = vpop.permute.xlu1 %286  ;;  %v289_v29 = vpop.permute.xlu0 %288  ;;  %v283_v30 = vsel %vm1209_vm11, %v276_v20, %v281_v27  ;;  %vm1036_vm11 = vcmp.eq.s32.totalorder %v376_v2, 1 }
 0x10d   : > { %v290_v31 = vrot.slane %v287_v28, 4  ;;  %v291_v32 = vrot.slane %v289_v29, 4  ;;  %v285_v35 = vmax.f32 %v274_v26, %v283_v30 }
 0x10f   : > { %v292_v34 = vsel %vm258_vm8, %v290_v31, %v291_v32 }
 0x110   : > { %v294_v36 = vsel %vm1208_vm12, %v287_v28, %v292_v34  ;;  %vm1030_vm12 = vcmp.eq.s32.totalorder %v401_v0, 1 }
 0x111   : > { %v975_v37 = vmax.f32 %v285_v35, %v294_v36 }
 0x113   : > { %298 = vrot.lane.b32.xlu1 %v975_v37, %s896_s29 }
 0x185   : > { %v299_v38 = vpop.permute.xlu1 %298 }
 0x186   : > { %v300_v40 = vrot.slane %v299_v38, 4 }
 0x188   : > { %v302_v41 = vsel %vm1207_vm14, %v300_v40, %v299_v38  ;;  %308 = vst.msk [vmem:[#allocation3 + $0x8] sm:$0xf] %vm1206_vm6, %v300_v40  ;;  %vm1012_vm6 = vcmp.eq.s32.totalorder %v316_v56, 1  ;;  %vm1026_vm14 = vcmp.eq.s32.totalorder %v348_v61, 1 }
 0x189   : > { %307 = vst.msk [vmem:[#allocation3] sm:$0xff] %vm980_vm15, %v302_v41 }
 0x18f   : > { %v310_v42 = vld [vmem:[#allocation3 + $0x8] sm:$0xf] }
 0x190   : > { %355 = vrot.lane.b32.xlu1 %v310_v42, %s897_s30  ;;  %330 = vrot.lane.b32.xlu0 %v310_v42, %s898_s6  ;;  %v990_v43 = vld [vmem:[#allocation3] sm:$0xff] }
 0x191   : > { %v998_v44 = vcombine.high %v990_v43, %v990_v43  ;;  %v409_v30 = vsel %vm1030_vm12, %v990_v43, -inf }
 0x194   : > { %351 = vrot.lane.b32.xlu1 %v990_v43, %s897_s30  ;;  %326 = vrot.lane.b32.xlu0 %v990_v43, %s898_s6 }
 0x198   : > { %383 = vrot.lane.b32.xlu0 %v990_v43, %s899_s7  ;;  %328 = vrot.lane.b32.xlu1 %v998_v44, %s898_s6 }
 0x19c   : > { %353 = vrot.lane.b32.xlu0 %v998_v44, %s897_s30  ;;  %385 = vrot.lane.b32.xlu1 %v998_v44, %s899_s7 }
 0x1a0   : > { %387 = vrot.lane.b32.xlu0 %v310_v42, %s899_s7 }
 0x202   : > { %v356_v48 = vpop.permute.xlu1 %355  ;;  %v331_v49 = vpop.permute.xlu0 %330 }
 0x206   : > { %v352_v53 = vpop.permute.xlu1 %351  ;;  %v327_v54 = vpop.permute.xlu0 %326 }
 0x20a   : > { %v384_v62 = vpop.permute.xlu0 %383  ;;  %v329_v63 = vpop.permute.xlu1 %328 }
 0x20b   : > { %v333_v7 = vsel %vm1211_vm13, %v327_v54, %v329_v63  ;;  %v334_v8 = vsel %vm1211_vm13, %v329_v63, %v331_v49  ;;  %vm1053_vm13 = vcmp.eq.s32.totalorder %v405_v3, 1 }
 0x20c   : > { %v337_v18 = vsel %vm1012_vm6, %v333_v7, -inf  ;;  %v338_v19 = vsel %vm1016_vm1, %v334_v8, -inf  ;;  %v410_v32 = vsel %vm1053_vm13, %v998_v44, -inf }
 0x20e   : > { %v354_v11 = vpop.permute.xlu0 %353  ;;  %v386_v13 = vpop.permute.xlu1 %385 }
 0x20f   : > { %v358_v14 = vsel %vm1210_vm3, %v352_v53, %v354_v11  ;;  %v359_v15 = vsel %vm1210_vm3, %v354_v11, %v356_v48  ;;  %v390_v17 = vsel %vm389_vm7, %v384_v62, %v386_v13  ;;  %vm1049_vm3 = vcmp.eq.s32.totalorder %v380_v10, 1 }
 0x210   : > { %v362_v20 = vsel %vm1020_vm2, %v358_v14, -inf  ;;  %v363_v21 = vsel %vm1026_vm14, %v359_v15, -inf  ;;  %v394_v26 = vsel %vm1036_vm11, %v390_v17, -inf }
 0x211   : > { %v364_v22 = vmax.f32 %v362_v20, %v337_v18  ;;  %v365_v23 = vmax.f32 %v363_v21, %v338_v19  ;;  %v411_v33 = vmax.f32 %v409_v30, %v394_v26 }
 0x212   : > { %v388_v27 = vpop.permute.xlu0 %387 }
 0x213   : > { %v368_v28 = vcombine.low %v364_v22, %v365_v23  ;;  %v391_v29 = vsel %vm389_vm7, %v386_v13, %v388_v27 }
 0x214   : > { %v395_v31 = vsel %vm1049_vm3, %v391_v29, -inf }
 0x215   : > { %v412_v34 = vmax.f32 %v410_v32, %v395_v31  ;;  %v370_v36 = vmax.f32 %v975_v37, %v368_v28 }
 0x217   : > { %v415_v35 = vcombine.low %v411_v33, %v412_v34 }
 0x219   : > { %v417_v38 = vmax.f32 %v370_v36, %v415_v35 }
 0x21b   : > { %419 = vrot.lane.b32.xlu1 %v417_v38, %s890_s24  ;;  %v662_v40 = vcombine.low %v417_v38, %v417_v38  ;;  %665 = vst [vmem:[#allocation4 + $0x8] sm:$0xf0] %v417_v38 }
 0x21d   : > { %664 = vst [vmem:[#allocation4] sm:$0xf0] %v662_v40 }
 0x28d   : > { %v420_v41 = vpop.permute.xlu1 %419 }
 0x28e   : > { %v421_v42 = vrot.slane %v420_v41, 4 }
 0x290   : > { %v422_v43 = vsel %vm1213_vm4, %v421_v42, %v420_v41  ;;  %426 = vst.msk [vmem:[#allocation2 + $0x8] sm:$0xf] %vm1212_vm0, %v421_v42  ;;  %vm1236_vm0 = vcmask 654336   ;;  %vm1237_vm4 = vcmask 523264  }
 0x291   : > { %425 = vst.msk [vmem:[#allocation2] sm:$0xff] %vm950_vm5, %v422_v43 }
 0x297   : > { %v428_v44 = vld [vmem:[#allocation2 + $0x8] sm:$0xf] }
 0x298   : > { %433 = vrot.lane.b32.xlu1 %v428_v44, %s892_s26  ;;  %v427_v45 = vld [vmem:[#allocation2] sm:$0xff] }
 0x299   : > { %431 = vrot.lane.b32.xlu0 %v427_v45, %s892_s26 }
 0x29c   : > { %443 = vrot.lane.b32.xlu1 %v428_v44, %s891_s25 }
 0x29d   : > { %441 = vrot.lane.b32.xlu0 %v427_v45, %s891_s25 }
 0x2a0   : > { %453 = vrot.lane.b32.xlu1 %v428_v44, %s893_s27 }
 0x2a1   : > { %451 = vrot.lane.b32.xlu0 %v427_v45, %s893_s27 }
 0x2a4   : > { %463 = vrot.lane.b32.xlu1 %v428_v44, %s894_s28 }
 0x2a5   : > { %461 = vrot.lane.b32.xlu0 %v427_v45, %s894_s28 }
 0x30a   : > { %v434_v37 = vpop.permute.xlu1 %433 }
 0x30b   : > { %v432_v46 = vpop.permute.xlu0 %431  ;;  %v436_v47 = vrot.slane %v434_v37, 4 }
 0x30c   : > { %v435_v48 = vrot.slane %v432_v46, 4 }
 0x30e   : > { %v444_v49 = vpop.permute.xlu1 %443  ;;  %v437_v52 = vsel %vm258_vm8, %v435_v48, %v436_v47 }
 0x30f   : > { %v446_v50 = vrot.slane %v444_v49, 4  ;;  %v442_v51 = vpop.permute.xlu0 %441  ;;  %v438_v56 = vsel %vm1215_vm9, %v432_v46, %v437_v52  ;;  %vm1239_vm9 = vcmask 11264  }
 0x310   : > { %v445_v53 = vrot.slane %v442_v51, 4  ;;  %v440_v61 = vmax.f32 %v427_v45, %v438_v56 }
 0x312   : > { %v447_v54 = vsel %vm258_vm8, %v445_v53, %v446_v50  ;;  %v454_v55 = vpop.permute.xlu1 %453 }
 0x313   : > { %v456_v57 = vrot.slane %v454_v55, 4  ;;  %v452_v58 = vpop.permute.xlu0 %451  ;;  %v448_v60 = vsel %vm1214_vm10, %v442_v51, %v447_v54  ;;  %vm1238_vm10 = vcmask 15360  }
 0x314   : > { %v455_v59 = vrot.slane %v452_v58, 4  ;;  %v450_v7 = vmax.f32 %v440_v61, %v448_v60 }
 0x316   : > { %v457_v62 = vsel %vm258_vm8, %v455_v59, %v456_v57  ;;  %v464_v63 = vpop.permute.xlu1 %463 }
 0x317   : > { %v458_v0 = vsel %vm1236_vm0, %v452_v58, %v457_v62  ;;  %v466_v2 = vrot.slane %v464_v63, 4  ;;  %v462_v3 = vpop.permute.xlu0 %461  ;;  %vm1240_vm0 = vcmask 1022976  }
 0x318   : > { %v465_v8 = vrot.slane %v462_v3, 4  ;;  %v460_v10 = vmax.f32 %v450_v7, %v458_v0 }
 0x31a   : > { %v467_v11 = vsel %vm258_vm8, %v465_v8, %v466_v2 }
 0x31b   : > { %v468_v13 = vsel %vm1237_vm4, %v462_v3, %v467_v11  ;;  %vm1241_vm4 = vmmov %vm1240_vm0 }
 0x31c   : > { %v470_v14 = vmax.f32 %v460_v10, %v468_v13 }
 0x31e   : > { %472 = vrot.lane.b32.xlu0 %v470_v14, %s896_s29 }
 0x390   : > { %v473_v15 = vpop.permute.xlu0 %472 }
 0x391   : > { %v474_v17 = vrot.slane %v473_v15, 4 }
 0x393   : > { %v475_v18 = vsel %vm1238_vm10, %v474_v17, %v473_v15  ;;  %479 = vst.msk [vmem:[#allocation3 + $0x8] sm:$0xf] %vm1239_vm9, %v474_v17  ;;  %vm1242_vm9 = vcmask 1039360  }
 0x394   : > { %478 = vst.msk [vmem:[#allocation3] sm:$0xff] %vm980_vm15, %v475_v18  ;;  %vm1243_vm10 = vmmov %vm1242_vm9 }
 0x39a   : > { %v481_v19 = vld [vmem:[#allocation3 + $0x8] sm:$0xf] }
 0x39b   : > { %501 = vrot.lane.b32.xlu0 %v481_v19, %s897_s30  ;;  %489 = vrot.lane.b32.xlu1 %v481_v19, %s898_s6  ;;  %v480_v20 = vld [vmem:[#allocation3] sm:$0xff] }
 0x39c   : > { %v484_v21 = vcombine.high %v480_v20, %v480_v20  ;;  %v529_v48 = vsel %vm1030_vm12, %v480_v20, -inf }
 0x39e   : > { %v530_v50 = vsel %vm1053_vm13, %v484_v21, -inf }
 0x39f   : > { %497 = vrot.lane.b32.xlu0 %v480_v20, %s897_s30  ;;  %485 = vrot.lane.b32.xlu1 %v480_v20, %s898_s6 }
 0x3a3   : > { %516 = vrot.lane.b32.xlu1 %v480_v20, %s899_s7  ;;  %487 = vrot.lane.b32.xlu0 %v484_v21, %s898_s6 }
 0x3a7   : > { %499 = vrot.lane.b32.xlu1 %v484_v21, %s897_s30  ;;  %518 = vrot.lane.b32.xlu0 %v484_v21, %s899_s7 }
 0x3ab   : > { %520 = vrot.lane.b32.xlu1 %v481_v19, %s899_s7 }
 0x40d   : > { %v502_v22 = vpop.permute.xlu0 %501  ;;  %v490_v23 = vpop.permute.xlu1 %489 }
 0x411   : > { %v498_v26 = vpop.permute.xlu0 %497  ;;  %v486_v27 = vpop.permute.xlu1 %485 }
 0x415   : > { %v517_v28 = vpop.permute.xlu1 %516  ;;  %v488_v29 = vpop.permute.xlu0 %487 }
 0x416   : > { %v491_v30 = vsel %vm1240_vm0, %v486_v27, %v488_v29  ;;  %v492_v31 = vsel %vm1241_vm4, %v488_v29, %v490_v23  ;;  %vm1244_vm0 = vcmask 261120   ;;  %vm1245_vm4 = vcmask 257024  }
 0x417   : > { %v495_v38 = vsel %vm1012_vm6, %v491_v30, -inf  ;;  %v496_v40 = vsel %vm1016_vm1, %v492_v31, -inf }
 0x419   : > { %v500_v32 = vpop.permute.xlu1 %499  ;;  %v519_v33 = vpop.permute.xlu0 %518 }
 0x41a   : > { %v503_v34 = vsel %vm1242_vm9, %v498_v26, %v500_v32  ;;  %v504_v35 = vsel %vm1243_vm10, %v500_v32, %v502_v22  ;;  %v522_v36 = vsel %vm389_vm7, %v517_v28, %v519_v33  ;;  %vm1247_vm9 = vcmask 785408  }
 0x41b   : > { %v507_v41 = vsel %vm1020_vm2, %v503_v34, -inf  ;;  %v508_v42 = vsel %vm1026_vm14, %v504_v35, -inf  ;;  %v526_v45 = vsel %vm1036_vm11, %v522_v36, -inf  ;;  %vm1248_vm10 = vcmask 654336  }
 0x41c   : > { %v509_v43 = vmax.f32 %v507_v41, %v495_v38  ;;  %v510_v44 = vmax.f32 %v508_v42, %v496_v40  ;;  %v531_v51 = vmax.f32 %v529_v48, %v526_v45  ;;  %v755_v42 = vld [vmem:[%s1203_s3] sm:$0xf] }
 0x41d   : > { %v521_v37 = vpop.permute.xlu1 %520 }
 0x41e   : > { %v513_v46 = vcombine.low %v509_v43, %v510_v44  ;;  %v523_v47 = vsel %vm389_vm7, %v519_v33, %v521_v37  ;;  %v763_v43 = vld [vmem:[%s1204_s4] sm:$0xf] }
 0x41f   : > { %v527_v49 = vsel %vm1049_vm3, %v523_v47, -inf }
 0x420   : > { %v532_v52 = vmax.f32 %v530_v50, %v527_v49  ;;  %v515_v54 = vmax.f32 %v470_v14, %v513_v46 }
 0x422   : > { %v535_v53 = vcombine.low %v531_v51, %v532_v52 }
 0x424   : > { %v537_v55 = vmax.f32 %v515_v54, %v535_v53 }
 0x426   : > { %539 = vrot.lane.b32.xlu0 %v537_v55, %s890_s24  ;;  %v666_v56 = vcombine.high %v537_v55, %v537_v55  ;;  %668 = vst [vmem:[#allocation4 + $0x10] sm:$0xf] %v537_v55 }
 0x428   : > { %669 = vst [vmem:[#allocation4 + $0x18] sm:$0xf] %v666_v56 }
 0x498   : > { %v540_v57 = vpop.permute.xlu0 %539 }
 0x499   : > { %v541_v58 = vrot.slane %v540_v57, 4 }
 0x49b   : > { %v542_v59 = vsel %vm1244_vm0, %v541_v58, %v540_v57  ;;  %546 = vst.msk [vmem:[#allocation2 + $0x8] sm:$0xf] %vm1245_vm4, %v541_v58  ;;  %vm1249_vm0 = vcmask 523264   ;;  %vm1250_vm4 = vcmask 15360  }
 0x49c   : > { %545 = vst.msk [vmem:[#allocation2] sm:$0xff] %vm950_vm5, %v542_v59  ;;  %vm1246_vm5 = vcmask 916480  }
 0x4a2   : > { %v548_v60 = vld [vmem:[#allocation2 + $0x8] sm:$0xf] }
 0x4a3   : > { %553 = vrot.lane.b32.xlu0 %v548_v60, %s892_s26  ;;  %v547_v61 = vld [vmem:[#allocation2] sm:$0xff] }
 0x4a4   : > { %551 = vrot.lane.b32.xlu1 %v547_v61, %s892_s26 }
 0x4a7   : > { %563 = vrot.lane.b32.xlu0 %v548_v60, %s891_s25 }
 0x4a8   : > { %561 = vrot.lane.b32.xlu1 %v547_v61, %s891_s25 }
 0x4ab   : > { %573 = vrot.lane.b32.xlu0 %v548_v60, %s893_s27 }
 0x4ac   : > { %571 = vrot.lane.b32.xlu1 %v547_v61, %s893_s27 }
 0x4af   : > { %583 = vrot.lane.b32.xlu0 %v548_v60, %s894_s28 }
 0x4b0   : > { %581 = vrot.lane.b32.xlu1 %v547_v61, %s894_s28 }
 0x515   : > { %v554_v4 = vpop.permute.xlu0 %553 }
 0x516   : > { %v552_v62 = vpop.permute.xlu1 %551  ;;  %v556_v63 = vrot.slane %v554_v4, 4 }
 0x517   : > { %v555_v0 = vrot.slane %v552_v62, 4 }
 0x519   : > { %v564_v2 = vpop.permute.xlu0 %563  ;;  %v557_v8 = vsel %vm258_vm8, %v555_v0, %v556_v63 }
 0x51a   : > { %v566_v3 = vrot.slane %v564_v2, 4  ;;  %v562_v7 = vpop.permute.xlu1 %561  ;;  %v558_v14 = vsel %vm1246_vm5, %v552_v62, %v557_v8  ;;  %vm1251_vm5 = vcmask 11264  }
 0x51b   : > { %v565_v10 = vrot.slane %v562_v7, 4  ;;  %v560_v20 = vmax.f32 %v547_v61, %v558_v14  ;;  %v676_v14 = vld [vmem:[#allocation4] sm:$0xff] }
 0x51d   : > { %v567_v11 = vsel %vm258_vm8, %v565_v10, %v566_v3  ;;  %v574_v13 = vpop.permute.xlu0 %573  ;;  %v677_v10 = vld [vmem:[#allocation4 + $0x8] sm:$0xff] }
 0x51e   : > { %v576_v15 = vrot.slane %v574_v13, 4  ;;  %v572_v17 = vpop.permute.xlu1 %571  ;;  %v568_v19 = vsel %vm1247_vm9, %v562_v7, %v567_v11  ;;  %vm1254_vm9 = vcmask 1039360  }
 0x51f   : > { %v575_v18 = vrot.slane %v572_v17, 4  ;;  %v570_v28 = vmax.f32 %v560_v20, %v568_v19 }
 0x521   : > { %v577_v21 = vsel %vm258_vm8, %v575_v18, %v576_v15  ;;  %v584_v22 = vpop.permute.xlu0 %583 }
 0x522   : > { %v578_v23 = vsel %vm1248_vm10, %v572_v17, %v577_v21  ;;  %v586_v26 = vrot.slane %v584_v22, 4  ;;  %v582_v27 = vpop.permute.xlu1 %581  ;;  %vm1255_vm10 = vmmov %vm1254_vm9 }
 0x523   : > { %v585_v29 = vrot.slane %v582_v27, 4  ;;  %v580_v30 = vmax.f32 %v570_v28, %v578_v23 }
 0x525   : > { %v587_v31 = vsel %vm258_vm8, %v585_v29, %v586_v26  ;;  %vm1252_vm8 = vcmask 1022976  }
 0x526   : > { %v588_v32 = vsel %vm1249_vm0, %v582_v27, %v587_v31 }
 0x527   : > { %v590_v33 = vmax.f32 %v580_v30, %v588_v32 }
 0x529   : > { %592 = vrot.lane.b32.xlu1 %v590_v33, %s896_s29 }
 0x59b   : > { %v593_v34 = vpop.permute.xlu1 %592 }
 0x59c   : > { %v594_v35 = vrot.slane %v593_v34, 4 }
 0x59e   : > { %v595_v36 = vsel %vm1250_vm4, %v594_v35, %v593_v34  ;;  %599 = vst.msk [vmem:[#allocation3 + $0x8] sm:$0xf] %vm1251_vm5, %v594_v35 }
 0x59f   : > { %598 = vst.msk [vmem:[#allocation3] sm:$0xff] %vm980_vm15, %v595_v36  ;;  %vm1253_vm15 = vmmov %vm1252_vm8 }
 0x5a5   : > { %v601_v38 = vld [vmem:[#allocation3 + $0x8] sm:$0xf] }
 0x5a6   : > { %621 = vrot.lane.b32.xlu1 %v601_v38, %s897_s30  ;;  %609 = vrot.lane.b32.xlu0 %v601_v38, %s898_s6  ;;  %v600_v40 = vld [vmem:[#allocation3] sm:$0xff] }
 0x5a7   : > { %v604_v41 = vcombine.high %v600_v40, %v600_v40  ;;  %v649_v1 = vsel %vm1030_vm12, %v600_v40, -inf }
 0x5a9   : > { %v650_v6 = vsel %vm1053_vm13, %v604_v41, -inf }
 0x5aa   : > { %617 = vrot.lane.b32.xlu1 %v600_v40, %s897_s30  ;;  %605 = vrot.lane.b32.xlu0 %v600_v40, %s898_s6 }
 0x5ae   : > { %636 = vrot.lane.b32.xlu0 %v600_v40, %s899_s7  ;;  %607 = vrot.lane.b32.xlu1 %v604_v41, %s898_s6 }
 0x5b2   : > { %619 = vrot.lane.b32.xlu0 %v604_v41, %s897_s30  ;;  %638 = vrot.lane.b32.xlu1 %v604_v41, %s899_s7 }
 0x5b6   : > { %640 = vrot.lane.b32.xlu0 %v601_v38, %s899_s7  ;;  %758 = vperm.xlu1 %875, %v755_v42  }
 0x5ba   : > { %766 = vperm.xlu0 %876, %v763_v43  }
 0x618   : > { %v622_v44 = vpop.permute.xlu1 %621  ;;  %v610_v45 = vpop.permute.xlu0 %609 }
 0x61c   : > { %v618_v37 = vpop.permute.xlu1 %617  ;;  %v606_v46 = vpop.permute.xlu0 %605 }
 0x620   : > { %v637_v47 = vpop.permute.xlu0 %636  ;;  %v608_v48 = vpop.permute.xlu1 %607 }
 0x621   : > { %v611_v49 = vsel %vm1252_vm8, %v606_v46, %v608_v48  ;;  %v612_v50 = vsel %vm1253_vm15, %v608_v48, %v610_v45 }
 0x622   : > { %v615_v56 = vsel %vm1012_vm6, %v611_v49, -inf  ;;  %v616_v57 = vsel %vm1016_vm1, %v612_v50, -inf  ;;  %vm680_vm6 = vcmask 130048  }
 0x624   : > { %v620_v51 = vpop.permute.xlu0 %619  ;;  %v639_v52 = vpop.permute.xlu1 %638 }
 0x625   : > { %v623_v53 = vsel %vm1254_vm9, %v618_v37, %v620_v51  ;;  %v624_v54 = vsel %vm1255_vm10, %v620_v51, %v622_v44  ;;  %v642_v55 = vsel %vm389_vm7, %v637_v47, %v639_v52 }
 0x626   : > { %v627_v58 = vsel %vm1020_vm2, %v623_v53, -inf  ;;  %v628_v59 = vsel %vm1026_vm14, %v624_v54, -inf  ;;  %v646_v4 = vsel %vm1036_vm11, %v642_v55, -inf }
 0x627   : > { %v629_v60 = vmax.f32 %v627_v58, %v615_v56  ;;  %v630_v61 = vmax.f32 %v628_v59, %v616_v57  ;;  %v651_v9 = vmax.f32 %v649_v1, %v646_v4 }
 0x628   : > { %v641_v62 = vpop.permute.xlu0 %640 }
 0x629   : > { %v633_v63 = vcombine.low %v629_v60, %v630_v61  ;;  %v643_v0 = vsel %vm389_vm7, %v639_v52, %v641_v62 }
 0x62a   : > { %v647_v5 = vsel %vm1049_vm3, %v643_v0, -inf }
 0x62b   : > { %v652_v2 = vmax.f32 %v650_v6, %v647_v5  ;;  %v635_v3 = vmax.f32 %v590_v33, %v633_v63 }
 0x62d   : > { %v655_v7 = vcombine.low %v651_v9, %v652_v2 }
 0x62f   : > { %v657_v8 = vmax.f32 %v635_v3, %v655_v7 }
 0x631   : > { %v671_v16 = vcombine.low %v657_v8, %v657_v8  ;;  %674 = vst [vmem:[#allocation4 + $0x18] sm:$0xf0] %v657_v8 }
 0x633   : > { %673 = vst [vmem:[#allocation4 + $0x10] sm:$0xf0] %v671_v16 }
 0x635   : > { %v759_v25 = vpop.permute.xlu1 %758 }
 0x638   : > { %v679_v11 = vld [vmem:[#allocation4 + $0x18] sm:$0xff] }
 0x639   : > { %v851_v13 = vpack.c.bf16 %v679_v11, %v677_v10  ;;  %v767_v18 = vpop.permute.xlu0 %766 }
 0x63a   : > { %v678_v12 = vld [vmem:[#allocation4 + $0x10] sm:$0xff] }
 0x63b   : > { %852 = vmatprep.subr.bf16.mxu0 %v851_v13  ;;  %v853_v15 = vpack.c.bf16 %v678_v12, %v676_v14 }
 0x63d   : > { %854 = vmatpush1.bf16.msra.mxu0 %v853_v15 }
 0x640   : > { %846 = vmatmul.mubr.msk.f32.vlgmr.msra.gmra.mrb[0].mxu0 %vm680_vm6, %v675_v24 }
 0x713   : > { %v750_v17 = vpop.f32.mrb[0].mxu0 }
 0x714   : > { %v761_v19 = vmul.f32 %v759_v25, %v750_v17  ;;  %v752_v20 = vpop.f32.mrb[1].mxu0 }
 0x715   : > { %v762_v21 = vmul.f32 %v759_v25, %v752_v20 }
 0x716   : > { %v769_v22 = vadd.f32 %v767_v18, %v761_v19 }
 0x717   : > { %v770_v23 = vadd.f32 %v767_v18, %v762_v21 }
 0x718   : > { %vm771_vm11 = vcmp.gt.f32.partialorder %v769_v22, 0.0  ;;  %v773_v26 = vmul.f32 0.1, %v769_v22 }
 0x719   : > { %vm772_vm12 = vcmp.gt.f32.partialorder %v770_v23, 0.0  ;;  %v774_v27 = vmul.f32 0.1, %v770_v23 }
 0x71a   : > { %v775_v28 = vsel %vm771_vm11, %v769_v22, %v773_v26 }
 0x71b   : > { %v776_v29 = vsel %vm772_vm12, %v770_v23, %v774_v27 }
 0x71c   : > { %v779_v30 = vcombine.low %v775_v28, %v776_v29 }
 0x71e   : > { %781 = vst [vmem:[%s224_s21] sm:$0xff] %v779_v30 }
 0x71f PF: > { %s15_s18 = sadd.s32 1, %s887_s18  }
 0x720   : > { %p12_p4 = scmp.ge.s32.totalorder %s15_s18, 4  }
 0x722   :  { %14 = sbr.rel (!%p12_p4) target bundleno = 1 (0x1), region = 70 }

</bundles_post_ra>
